<compile_context>
chip_gen: v5e
topology: v5e:2x2
jax: 0.10.0
libtpu: 0.0.40
codegen_flags: <defaults>
</compile_context>

<pallas_src>
import functools

import jax
import jax.numpy as jnp
import numpy as np
from jax.experimental import pallas as pl
from jax.experimental.pallas import tpu as pltpu

NZ = 32      # nz  (latent dim)
NGF = 8      # ngf (generator feature maps)
NC = 1       # nc  (output channels, MNIST)
K = 4        # ConvTranspose2d kernel size
STRIDE = 2
PAD = 1
BN_EPS = 1e-5

H0 = W0 = 7          # spatial size after Linear + view
C1_IN = NGF * 2      # 16
C1_OUT = NGF         # 8
H1 = W1 = 14
C2_IN = NGF          # 8
C2_OUT = NC          # 1
H2 = W2 = 28


# --------------------------------- Pallas kernel ----------------------------------

def _generator_kernel(x_ref, wlin_ref, blin_ref,
                      l1_ref, r1_ref, b1_ref,
                      l2_ref, r2_ref, b2_ref,
                      o_ref, a1_ref, *, n_batch):
    """Whole Generator forward for a batch of `n_batch` latents, fully VMEM-resident."""
    # ---- Linear: x[N, NZ] -> A1[(y*N + n), (x*C1_IN + c)]  (rows y-major, n-minor)
    x = x_ref[...]
    for y in range(H0):
        h = jnp.dot(x, wlin_ref[y], preferred_element_type=jnp.float32) + blin_ref[y]
        a1_ref[y * n_batch:(y + 1) * n_batch, :] = h
    a1 = a1_ref[...]                                      # [H0*N, W0*C1_IN]

    # ---- ConvTranspose2d(16->8, k4 s2 p1) + BatchNorm (folded) + ReLU
    acc1 = b1_ref[...]                                    # bias = BN shift, [1, W1*C1_OUT]
    for ky in range(K):
        acc1 = acc1 + jnp.dot(
            l1_ref[ky],
            jnp.dot(a1, r1_ref[ky], preferred_element_type=jnp.float32),
            preferred_element_type=jnp.float32)
    a2 = jnp.maximum(acc1, 0.0)                           # [H1*N, W1*C1_OUT]

    # ---- ConvTranspose2d(8->1, k4 s2 p1) + BatchNorm (folded) + ReLU, then Tanh
    acc2 = b2_ref[...]                                    # [1, W2*C2_OUT]
    for ky in range(K):
        acc2 = acc2 + jnp.dot(
            l2_ref[ky],
            jnp.dot(a2, r2_ref[ky], preferred_element_type=jnp.float32),
            preferred_element_type=jnp.float32)
    o_ref[...] = jnp.tanh(jnp.maximum(acc2, 0.0))         # rows (n-major, oy), lanes ox


def generator_forward(x, prepped):
    n = x.shape[0]
    assert n == prepped["n_batch"], "prepared constants were built for a different batch"
    out2d = pl.pallas_call(
        functools.partial(_generator_kernel, n_batch=n),
        out_shape=jax.ShapeDtypeStruct((n * H2, W2 * C2_OUT), jnp.float32),
        scratch_shapes=[pltpu.VMEM((H0 * n, W0 * C1_IN), jnp.float32)],
    )(x, prepped["wlin"], prepped["blin"],
      prepped["l1"], prepped["r1"], prepped["b1"],
      prepped["l2"], prepped["r2"], prepped["b2"])
    # rows are n-major so this is a pure (free) reshape back to NCHW
    return out2d.reshape(n, C2_OUT, H2, W2)


# ----------------------- host-side constant-operand preparation -------------------

def _conv_transpose_mats(w, bn, h_in, w_in, n_batch, out_rows_batch_major):
    """Constants so that ConvTranspose2d(k4,s2,p1,bias=False)+BN(eval) on activations
    laid out as A[(iy*n + b), (ix*C_in + c)] becomes  sum_ky L[ky] @ A @ R[ky] + bias."""
    w = np.asarray(w, np.float64)                         # [C_in, C_out, K, K]
    c_in, c_out = w.shape[0], w.shape[1]
    h_out, w_out = STRIDE * h_in, STRIDE * w_in
    gamma, beta, mean, var = (np.asarray(t, np.float64) for t in bn)
    scale = gamma / np.sqrt(var + BN_EPS)                 # BN scale folded into R
    shift = beta - mean * scale                           # BN shift -> bias vector

    # L[ky]: 0/1 row scatter; oy = STRIDE*iy - PAD + ky
    L = np.zeros((K, n_batch * h_out, n_batch * h_in), np.float32)
    for ky in range(K):
        for oy in range(h_out):
            num = oy + PAD - ky
            if num % STRIDE != 0:
                continue
            iy = num // STRIDE
            if not (0 <= iy < h_in):
                continue
            for b in range(n_batch):
                r_out = b * h_out + oy if out_rows_batch_major else oy * n_batch + b
                L[ky, r_out, iy * n_batch + b] = 1.0

    # R[ky]: x-taps + channel mixing (+ BN scale); ox = STRIDE*ix - PAD + kx
    R = np.zeros((K, w_in * c_in, w_out * c_out), np.float32)
    for ky in range(K):
        for ox in range(w_out):
            for ix in range(w_in):
                kx = ox + PAD - STRIDE * ix
                if not (0 <= kx < K):
                    continue
                R[ky, ix * c_in:(ix + 1) * c_in, ox * c_out:(ox + 1) * c_out] = \
                    w[:, :, ky, kx] * scale[None, :]

    bias = np.tile(shift, w_out).astype(np.float32)[None, :]     # [1, w_out*c_out]
    return jnp.asarray(L), jnp.asarray(R), jnp.asarray(bias)


def prepare_generator(params, n_batch):
    """Precompute all constant kernel operands (host side, once)."""
    # Linear weight, re-laid out per output row y:
    #   wlin[y][k, x*C1_IN + c] = W[c*49 + y*7 + x, k]   (matches .view(-1, 16, 7, 7))
    lin_w = np.asarray(params["lin_w"], np.float32)       # PyTorch [out_features, in_features]
    lin_b = np.asarray(params["lin_b"], np.float32)
    wlin = np.zeros((H0, NZ, W0 * C1_IN), np.float32)
    blin = np.zeros((H0, 1, W0 * C1_IN), np.float32)
    for y in range(H0):
        for xx in range(W0):
            for c in range(C1_IN):
                f = c * (H0 * W0) + y * W0 + xx
                wlin[y, :, xx * C1_IN + c] = lin_w[f, :]
                blin[y, 0, xx * C1_IN + c] = lin_b[f]

    l1, r1, b1 = _conv_transpose_mats(params["conv1_w"], params["bn1"],
                                      H0, W0, n_batch, out_rows_batch_major=False)
    l2, r2, b2 = _conv_transpose_mats(params["conv2_w"], params["bn2"],
                                      H1, W1, n_batch, out_rows_batch_major=True)
    return dict(n_batch=n_batch,
                wlin=jnp.asarray(wlin), blin=jnp.asarray(blin),
                l1=l1, r1=r1, b1=b1, l2=l2, r2=r2, b2=b2)


# ------------------------------- params / reference --------------------------------

def init_params(key):
    keys = jax.random.split(key, 6)
    D = C1_IN * H0 * W0                                   # 784

    lin_w = 0.05 * jax.random.normal(keys[0], (D, NZ), jnp.float32)   # PyTorch [out, in]
    lin_b = 0.05 * jax.random.normal(keys[1], (D,), jnp.float32)
    conv1_w = 0.05 * jax.random.normal(keys[2], (C1_IN, C1_OUT, K, K), jnp.float32)
    conv2_w = 0.05 * jax.random.normal(keys[3], (C2_IN, C2_OUT, K, K), jnp.float32)

    def bn(k, c):
        k1, k2, k3, k4 = jax.random.split(k, 4)
        gamma = 1.0 + 0.1 * jax.random.normal(k1, (c,), jnp.float32)
        beta = 0.1 * jax.random.normal(k2, (c,), jnp.float32)
        r_mean = 0.1 * jax.random.normal(k3, (c,), jnp.float32)
        r_var = jnp.abs(jax.random.normal(k4, (c,), jnp.float32)) + 0.5
        return (gamma, beta, r_mean, r_var)

    return dict(lin_w=lin_w, lin_b=lin_b, conv1_w=conv1_w, conv2_w=conv2_w,
                bn1=bn(keys[4], C1_OUT), bn2=bn(keys[5], C2_OUT))


def _reference_forward(x, params):
    """Pure-NumPy float64 reference of the PyTorch module (eval-mode BatchNorm)."""
    x = np.asarray(x, np.float64)
    lin_w = np.asarray(params["lin_w"], np.float64)
    lin_b = np.asarray(params["lin_b"], np.float64)
    h = (x @ lin_w.T + lin_b).reshape(-1, C1_IN, H0, W0)

    def conv_t_bn_relu(a, w, bn):
        w = np.asarray(w, np.float64)
        gamma, beta, mean, var = (np.asarray(t, np.float64) for t in bn)
        n, c, hh, ww = a.shape
        c_out = w.shape[1]
        out = np.zeros((n, c_out, 2 * hh, 2 * ww), np.float64)
        for iy in range(hh):
            for ix in range(ww):
                for ky in range(K):
                    for kx in range(K):
                        oy = STRIDE * iy - PAD + ky
                        ox = STRIDE * ix - PAD + kx
                        if 0 <= oy < 2 * hh and 0 <= ox < 2 * ww:
                            out[:, :, oy, ox] += a[:, :, iy, ix] @ w[:, :, ky, kx]
        scale = gamma / np.sqrt(var + BN_EPS)
        shift = beta - mean * scale
        return np.maximum(out * scale[None, :, None, None] + shift[None, :, None, None], 0.0)

    h = conv_t_bn_relu(h, params["conv1_w"], params["bn1"])
    h = conv_t_bn_relu(h, params["conv2_w"], params["bn2"])
    return np.tanh(h)


if __name__ == "__main__":
    key = jax.random.PRNGKey(0)
    pkey, xkey = jax.random.split(key)
    params = init_params(pkey)
    x = jax.random.normal(xkey, (2, NZ), jnp.float32)     # batch=2 latent vectors

    prepped = prepare_generator(params, n_batch=x.shape[0])
    out = generator_forward(x, prepped)
    out = jax.block_until_ready(out)

    assert out.shape == (2, NC, 28, 28), out.shape
    assert bool(jnp.all(jnp.isfinite(out)))

    # structural-correctness check vs a float64 NumPy reference (tolerance is loose to
    # accommodate the MXU's default reduced-precision f32 matmul passes)
    ref = _reference_forward(x, params)
    np.testing.assert_allclose(np.asarray(out, np.float64), ref, rtol=2e-2, atol=2e-2)
    print("KERNEL_OK")
</pallas_src>

<mosaic_0001>
module attributes {stable_mosaic.version = 11 : i64} {
  func.func @_generator_kernel(%arg0: memref<2x32xf32, #tpu.memory_space<vmem>>, %arg1: memref<7x32x112xf32, #tpu.memory_space<vmem>>, %arg2: memref<7x1x112xf32, #tpu.memory_space<vmem>>, %arg3: memref<4x28x14xf32, #tpu.memory_space<vmem>>, %arg4: memref<4x112x112xf32, #tpu.memory_space<vmem>>, %arg5: memref<1x112xf32, #tpu.memory_space<vmem>>, %arg6: memref<4x56x28xf32, #tpu.memory_space<vmem>>, %arg7: memref<4x112x28xf32, #tpu.memory_space<vmem>>, %arg8: memref<1x28xf32, #tpu.memory_space<vmem>>, %arg9: memref<56x28xf32, #tpu.memory_space<vmem>>, %arg10: memref<14x112xf32, #tpu.memory_space<vmem>>) attributes {dimension_semantics = [], scalar_prefetch = 0 : i64, scratch_operands = 1 : i64, tpu.core_type = #tpu.core_type<tc>} {
    %c0 = arith.constant 0 : index
    %c0_0 = arith.constant 0 : index
    %0 = vector.load %arg0[%c0, %c0_0] : memref<2x32xf32, #tpu.memory_space<vmem>>, vector<2x32xf32>
    %c0_1 = arith.constant 0 : index
    %c0_2 = arith.constant 0 : index
    %c0_3 = arith.constant 0 : index
    %1 = vector.load %arg1[%c0_1, %c0_2, %c0_3] : memref<7x32x112xf32, #tpu.memory_space<vmem>>, vector<1x32x112xf32>
    %2 = vector.shape_cast %1 : vector<1x32x112xf32> to vector<32x112xf32>
    %cst = arith.constant dense<0.000000e+00> : vector<2x112xf32>
    %3 = tpu.matmul %0, %2, %cst {dimension_numbers = #tpu.dot_dimension_numbers<[1], [0], [0], [1], [0, 0, 1, 1], [], []>} : vector<2x32xf32>, vector<32x112xf32>, vector<2x112xf32> -> vector<2x112xf32>
    %c0_4 = arith.constant 0 : index
    %c0_5 = arith.constant 0 : index
    %c0_6 = arith.constant 0 : index
    %4 = vector.load %arg2[%c0_4, %c0_5, %c0_6] : memref<7x1x112xf32, #tpu.memory_space<vmem>>, vector<1x1x112xf32>
    %5 = vector.shape_cast %4 : vector<1x1x112xf32> to vector<1x112xf32>
    %6 = vector.broadcast %5 : vector<1x112xf32> to vector<2x112xf32>
    %7 = arith.addf %3, %6 : vector<2x112xf32>
    %c0_7 = arith.constant 0 : index
    %c0_8 = arith.constant 0 : index
    %8 = vector.load %arg10[%c0_7, %c0_8] : memref<14x112xf32, #tpu.memory_space<vmem>>, vector<2x112xf32>
    tpu.vector_store %arg10[%c0_7, %c0_8], %7 {strides = array<i32>} : memref<14x112xf32, #tpu.memory_space<vmem>>, vector<2x112xf32>,
    %c1 = arith.constant 1 : index
    %c0_9 = arith.constant 0 : index
    %c0_10 = arith.constant 0 : index
    %9 = vector.load %arg1[%c1, %c0_9, %c0_10] : memref<7x32x112xf32, #tpu.memory_space<vmem>>, vector<1x32x112xf32>
    %10 = vector.shape_cast %9 : vector<1x32x112xf32> to vector<32x112xf32>
    %cst_11 = arith.constant dense<0.000000e+00> : vector<2x112xf32>
    %11 = tpu.matmul %0, %10, %cst_11 {dimension_numbers = #tpu.dot_dimension_numbers<[1], [0], [0], [1], [0, 0, 1, 1], [], []>} : vector<2x32xf32>, vector<32x112xf32>, vector<2x112xf32> -> vector<2x112xf32>
    %c1_12 = arith.constant 1 : index
    %c0_13 = arith.constant 0 : index
    %c0_14 = arith.constant 0 : index
    %12 = vector.load %arg2[%c1_12, %c0_13, %c0_14] : memref<7x1x112xf32, #tpu.memory_space<vmem>>, vector<1x1x112xf32>
    %13 = vector.shape_cast %12 : vector<1x1x112xf32> to vector<1x112xf32>
    %14 = vector.broadcast %13 : vector<1x112xf32> to vector<2x112xf32>
    %15 = arith.addf %11, %14 : vector<2x112xf32>
    %c2 = arith.constant 2 : index
    %c0_15 = arith.constant 0 : index
    %16 = vector.load %arg10[%c2, %c0_15] : memref<14x112xf32, #tpu.memory_space<vmem>>, vector<2x112xf32>
    tpu.vector_store %arg10[%c2, %c0_15], %15 {strides = array<i32>} : memref<14x112xf32, #tpu.memory_space<vmem>>, vector<2x112xf32>,
    %c2_16 = arith.constant 2 : index
    %c0_17 = arith.constant 0 : index
    %c0_18 = arith.constant 0 : index
    %17 = vector.load %arg1[%c2_16, %c0_17, %c0_18] : memref<7x32x112xf32, #tpu.memory_space<vmem>>, vector<1x32x112xf32>
    %18 = vector.shape_cast %17 : vector<1x32x112xf32> to vector<32x112xf32>
    %cst_19 = arith.constant dense<0.000000e+00> : vector<2x112xf32>
    %19 = tpu.matmul %0, %18, %cst_19 {dimension_numbers = #tpu.dot_dimension_numbers<[1], [0], [0], [1], [0, 0, 1, 1], [], []>} : vector<2x32xf32>, vector<32x112xf32>, vector<2x112xf32> -> vector<2x112xf32>
    %c2_20 = arith.constant 2 : index
    %c0_21 = arith.constant 0 : index
    %c0_22 = arith.constant 0 : index
    %20 = vector.load %arg2[%c2_20, %c0_21, %c0_22] : memref<7x1x112xf32, #tpu.memory_space<vmem>>, vector<1x1x112xf32>
    %21 = vector.shape_cast %20 : vector<1x1x112xf32> to vector<1x112xf32>
    %22 = vector.broadcast %21 : vector<1x112xf32> to vector<2x112xf32>
    %23 = arith.addf %19, %22 : vector<2x112xf32>
    %c4 = arith.constant 4 : index
    %c0_23 = arith.constant 0 : index
    %24 = vector.load %arg10[%c4, %c0_23] : memref<14x112xf32, #tpu.memory_space<vmem>>, vector<2x112xf32>
    tpu.vector_store %arg10[%c4, %c0_23], %23 {strides = array<i32>} : memref<14x112xf32, #tpu.memory_space<vmem>>, vector<2x112xf32>,
    %c3 = arith.constant 3 : index
    %c0_24 = arith.constant 0 : index
    %c0_25 = arith.constant 0 : index
    %25 = vector.load %arg1[%c3, %c0_24, %c0_25] : memref<7x32x112xf32, #tpu.memory_space<vmem>>, vector<1x32x112xf32>
    %26 = vector.shape_cast %25 : vector<1x32x112xf32> to vector<32x112xf32>
    %cst_26 = arith.constant dense<0.000000e+00> : vector<2x112xf32>
    %27 = tpu.matmul %0, %26, %cst_26 {dimension_numbers = #tpu.dot_dimension_numbers<[1], [0], [0], [1], [0, 0, 1, 1], [], []>} : vector<2x32xf32>, vector<32x112xf32>, vector<2x112xf32> -> vector<2x112xf32>
    %c3_27 = arith.constant 3 : index
    %c0_28 = arith.constant 0 : index
    %c0_29 = arith.constant 0 : index
    %28 = vector.load %arg2[%c3_27, %c0_28, %c0_29] : memref<7x1x112xf32, #tpu.memory_space<vmem>>, vector<1x1x112xf32>
    %29 = vector.shape_cast %28 : vector<1x1x112xf32> to vector<1x112xf32>
    %30 = vector.broadcast %29 : vector<1x112xf32> to vector<2x112xf32>
    %31 = arith.addf %27, %30 : vector<2x112xf32>
    %c6 = arith.constant 6 : index
    %c0_30 = arith.constant 0 : index
    %32 = vector.load %arg10[%c6, %c0_30] : memref<14x112xf32, #tpu.memory_space<vmem>>, vector<2x112xf32>
    tpu.vector_store %arg10[%c6, %c0_30], %31 {strides = array<i32>} : memref<14x112xf32, #tpu.memory_space<vmem>>, vector<2x112xf32>,
    %c4_31 = arith.constant 4 : index
    %c0_32 = arith.constant 0 : index
    %c0_33 = arith.constant 0 : index
    %33 = vector.load %arg1[%c4_31, %c0_32, %c0_33] : memref<7x32x112xf32, #tpu.memory_space<vmem>>, vector<1x32x112xf32>
    %34 = vector.shape_cast %33 : vector<1x32x112xf32> to vector<32x112xf32>
    %cst_34 = arith.constant dense<0.000000e+00> : vector<2x112xf32>
    %35 = tpu.matmul %0, %34, %cst_34 {dimension_numbers = #tpu.dot_dimension_numbers<[1], [0], [0], [1], [0, 0, 1, 1], [], []>} : vector<2x32xf32>, vector<32x112xf32>, vector<2x112xf32> -> vector<2x112xf32>
    %c4_35 = arith.constant 4 : index
    %c0_36 = arith.constant 0 : index
    %c0_37 = arith.constant 0 : index
    %36 = vector.load %arg2[%c4_35, %c0_36, %c0_37] : memref<7x1x112xf32, #tpu.memory_space<vmem>>, vector<1x1x112xf32>
    %37 = vector.shape_cast %36 : vector<1x1x112xf32> to vector<1x112xf32>
    %38 = vector.broadcast %37 : vector<1x112xf32> to vector<2x112xf32>
    %39 = arith.addf %35, %38 : vector<2x112xf32>
    %c8 = arith.constant 8 : index
    %c0_38 = arith.constant 0 : index
    %40 = vector.load %arg10[%c8, %c0_38] : memref<14x112xf32, #tpu.memory_space<vmem>>, vector<2x112xf32>
    tpu.vector_store %arg10[%c8, %c0_38], %39 {strides = array<i32>} : memref<14x112xf32, #tpu.memory_space<vmem>>, vector<2x112xf32>,
    %c5 = arith.constant 5 : index
    %c0_39 = arith.constant 0 : index
    %c0_40 = arith.constant 0 : index
    %41 = vector.load %arg1[%c5, %c0_39, %c0_40] : memref<7x32x112xf32, #tpu.memory_space<vmem>>, vector<1x32x112xf32>
    %42 = vector.shape_cast %41 : vector<1x32x112xf32> to vector<32x112xf32>
    %cst_41 = arith.constant dense<0.000000e+00> : vector<2x112xf32>
    %43 = tpu.matmul %0, %42, %cst_41 {dimension_numbers = #tpu.dot_dimension_numbers<[1], [0], [0], [1], [0, 0, 1, 1], [], []>} : vector<2x32xf32>, vector<32x112xf32>, vector<2x112xf32> -> vector<2x112xf32>
    %c5_42 = arith.constant 5 : index
    %c0_43 = arith.constant 0 : index
    %c0_44 = arith.constant 0 : index
    %44 = vector.load %arg2[%c5_42, %c0_43, %c0_44] : memref<7x1x112xf32, #tpu.memory_space<vmem>>, vector<1x1x112xf32>
    %45 = vector.shape_cast %44 : vector<1x1x112xf32> to vector<1x112xf32>
    %46 = vector.broadcast %45 : vector<1x112xf32> to vector<2x112xf32>
    %47 = arith.addf %43, %46 : vector<2x112xf32>
    %c10 = arith.constant 10 : index
    %c0_45 = arith.constant 0 : index
    %48 = vector.load %arg10[%c10, %c0_45] : memref<14x112xf32, #tpu.memory_space<vmem>>, vector<2x112xf32>
    tpu.vector_store %arg10[%c10, %c0_45], %47 {strides = array<i32>} : memref<14x112xf32, #tpu.memory_space<vmem>>, vector<2x112xf32>,
    %c6_46 = arith.constant 6 : index
    %c0_47 = arith.constant 0 : index
    %c0_48 = arith.constant 0 : index
    %49 = vector.load %arg1[%c6_46, %c0_47, %c0_48] : memref<7x32x112xf32, #tpu.memory_space<vmem>>, vector<1x32x112xf32>
    %50 = vector.shape_cast %49 : vector<1x32x112xf32> to vector<32x112xf32>
    %cst_49 = arith.constant dense<0.000000e+00> : vector<2x112xf32>
    %51 = tpu.matmul %0, %50, %cst_49 {dimension_numbers = #tpu.dot_dimension_numbers<[1], [0], [0], [1], [0, 0, 1, 1], [], []>} : vector<2x32xf32>, vector<32x112xf32>, vector<2x112xf32> -> vector<2x112xf32>
    %c6_50 = arith.constant 6 : index
    %c0_51 = arith.constant 0 : index
    %c0_52 = arith.constant 0 : index
    %52 = vector.load %arg2[%c6_50, %c0_51, %c0_52] : memref<7x1x112xf32, #tpu.memory_space<vmem>>, vector<1x1x112xf32>
    %53 = vector.shape_cast %52 : vector<1x1x112xf32> to vector<1x112xf32>
    %54 = vector.broadcast %53 : vector<1x112xf32> to vector<2x112xf32>
    %55 = arith.addf %51, %54 : vector<2x112xf32>
    %c12 = arith.constant 12 : index
    %c0_53 = arith.constant 0 : index
    %56 = vector.load %arg10[%c12, %c0_53] : memref<14x112xf32, #tpu.memory_space<vmem>>, vector<2x112xf32>
    tpu.vector_store %arg10[%c12, %c0_53], %55 {strides = array<i32>} : memref<14x112xf32, #tpu.memory_space<vmem>>, vector<2x112xf32>,
    %c0_54 = arith.constant 0 : index
    %c0_55 = arith.constant 0 : index
    %57 = vector.load %arg10[%c0_54, %c0_55] : memref<14x112xf32, #tpu.memory_space<vmem>>, vector<14x112xf32>
    %c0_56 = arith.constant 0 : index
    %c0_57 = arith.constant 0 : index
    %58 = vector.load %arg5[%c0_56, %c0_57] : memref<1x112xf32, #tpu.memory_space<vmem>>, vector<1x112xf32>
    %c0_58 = arith.constant 0 : index
    %c0_59 = arith.constant 0 : index
    %c0_60 = arith.constant 0 : index
    %59 = vector.load %arg3[%c0_58, %c0_59, %c0_60] : memref<4x28x14xf32, #tpu.memory_space<vmem>>, vector<1x28x14xf32>
    %60 = vector.shape_cast %59 : vector<1x28x14xf32> to vector<28x14xf32>
    %c0_61 = arith.constant 0 : index
    %c0_62 = arith.constant 0 : index
    %c0_63 = arith.constant 0 : index
    %61 = vector.load %arg4[%c0_61, %c0_62, %c0_63] : memref<4x112x112xf32, #tpu.memory_space<vmem>>, vector<1x112x112xf32>
    %62 = vector.shape_cast %61 : vector<1x112x112xf32> to vector<112x112xf32>
    %cst_64 = arith.constant dense<0.000000e+00> : vector<14x112xf32>
    %63 = tpu.matmul %57, %62, %cst_64 {dimension_numbers = #tpu.dot_dimension_numbers<[1], [0], [0], [1], [0, 0, 1, 1], [], []>} : vector<14x112xf32>, vector<112x112xf32>, vector<14x112xf32> -> vector<14x112xf32>
    %cst_65 = arith.constant dense<0.000000e+00> : vector<28x112xf32>
    %64 = tpu.matmul %60, %63, %cst_65 {dimension_numbers = #tpu.dot_dimension_numbers<[1], [0], [0], [1], [0, 0, 1, 1], [], []>} : vector<28x14xf32>, vector<14x112xf32>, vector<28x112xf32> -> vector<28x112xf32>
    %65 = vector.broadcast %58 : vector<1x112xf32> to vector<28x112xf32>
    %66 = arith.addf %65, %64 : vector<28x112xf32>
    %c1_66 = arith.constant 1 : index
    %c0_67 = arith.constant 0 : index
    %c0_68 = arith.constant 0 : index
    %67 = vector.load %arg3[%c1_66, %c0_67, %c0_68] : memref<4x28x14xf32, #tpu.memory_space<vmem>>, vector<1x28x14xf32>
    %68 = vector.shape_cast %67 : vector<1x28x14xf32> to vector<28x14xf32>
    %c1_69 = arith.constant 1 : index
    %c0_70 = arith.constant 0 : index
    %c0_71 = arith.constant 0 : index
    %69 = vector.load %arg4[%c1_69, %c0_70, %c0_71] : memref<4x112x112xf32, #tpu.memory_space<vmem>>, vector<1x112x112xf32>
    %70 = vector.shape_cast %69 : vector<1x112x112xf32> to vector<112x112xf32>
    %cst_72 = arith.constant dense<0.000000e+00> : vector<14x112xf32>
    %71 = tpu.matmul %57, %70, %cst_72 {dimension_numbers = #tpu.dot_dimension_numbers<[1], [0], [0], [1], [0, 0, 1, 1], [], []>} : vector<14x112xf32>, vector<112x112xf32>, vector<14x112xf32> -> vector<14x112xf32>
    %cst_73 = arith.constant dense<0.000000e+00> : vector<28x112xf32>
    %72 = tpu.matmul %68, %71, %cst_73 {dimension_numbers = #tpu.dot_dimension_numbers<[1], [0], [0], [1], [0, 0, 1, 1], [], []>} : vector<28x14xf32>, vector<14x112xf32>, vector<28x112xf32> -> vector<28x112xf32>
    %73 = arith.addf %66, %72 : vector<28x112xf32>
    %c2_74 = arith.constant 2 : index
    %c0_75 = arith.constant 0 : index
    %c0_76 = arith.constant 0 : index
    %74 = vector.load %arg3[%c2_74, %c0_75, %c0_76] : memref<4x28x14xf32, #tpu.memory_space<vmem>>, vector<1x28x14xf32>
    %75 = vector.shape_cast %74 : vector<1x28x14xf32> to vector<28x14xf32>
    %c2_77 = arith.constant 2 : index
    %c0_78 = arith.constant 0 : index
    %c0_79 = arith.constant 0 : index
    %76 = vector.load %arg4[%c2_77, %c0_78, %c0_79] : memref<4x112x112xf32, #tpu.memory_space<vmem>>, vector<1x112x112xf32>
    %77 = vector.shape_cast %76 : vector<1x112x112xf32> to vector<112x112xf32>
    %cst_80 = arith.constant dense<0.000000e+00> : vector<14x112xf32>
    %78 = tpu.matmul %57, %77, %cst_80 {dimension_numbers = #tpu.dot_dimension_numbers<[1], [0], [0], [1], [0, 0, 1, 1], [], []>} : vector<14x112xf32>, vector<112x112xf32>, vector<14x112xf32> -> vector<14x112xf32>
    %cst_81 = arith.constant dense<0.000000e+00> : vector<28x112xf32>
    %79 = tpu.matmul %75, %78, %cst_81 {dimension_numbers = #tpu.dot_dimension_numbers<[1], [0], [0], [1], [0, 0, 1, 1], [], []>} : vector<28x14xf32>, vector<14x112xf32>, vector<28x112xf32> -> vector<28x112xf32>
    %80 = arith.addf %73, %79 : vector<28x112xf32>
    %c3_82 = arith.constant 3 : index
    %c0_83 = arith.constant 0 : index
    %c0_84 = arith.constant 0 : index
    %81 = vector.load %arg3[%c3_82, %c0_83, %c0_84] : memref<4x28x14xf32, #tpu.memory_space<vmem>>, vector<1x28x14xf32>
    %82 = vector.shape_cast %81 : vector<1x28x14xf32> to vector<28x14xf32>
    %c3_85 = arith.constant 3 : index
    %c0_86 = arith.constant 0 : index
    %c0_87 = arith.constant 0 : index
    %83 = vector.load %arg4[%c3_85, %c0_86, %c0_87] : memref<4x112x112xf32, #tpu.memory_space<vmem>>, vector<1x112x112xf32>
    %84 = vector.shape_cast %83 : vector<1x112x112xf32> to vector<112x112xf32>
    %cst_88 = arith.constant dense<0.000000e+00> : vector<14x112xf32>
    %85 = tpu.matmul %57, %84, %cst_88 {dimension_numbers = #tpu.dot_dimension_numbers<[1], [0], [0], [1], [0, 0, 1, 1], [], []>} : vector<14x112xf32>, vector<112x112xf32>, vector<14x112xf32> -> vector<14x112xf32>
    %cst_89 = arith.constant dense<0.000000e+00> : vector<28x112xf32>
    %86 = tpu.matmul %82, %85, %cst_89 {dimension_numbers = #tpu.dot_dimension_numbers<[1], [0], [0], [1], [0, 0, 1, 1], [], []>} : vector<28x14xf32>, vector<14x112xf32>, vector<28x112xf32> -> vector<28x112xf32>
    %87 = arith.addf %80, %86 : vector<28x112xf32>
    %cst_90 = arith.constant 0.000000e+00 : f32
    %88 = vector.broadcast %cst_90 : f32 to vector<28x112xf32>
    %89 = arith.maximumf %87, %88 : vector<28x112xf32>
    %c0_91 = arith.constant 0 : index
    %c0_92 = arith.constant 0 : index
    %90 = vector.load %arg8[%c0_91, %c0_92] : memref<1x28xf32, #tpu.memory_space<vmem>>, vector<1x28xf32>
    %c0_93 = arith.constant 0 : index
    %c0_94 = arith.constant 0 : index
    %c0_95 = arith.constant 0 : index
    %91 = vector.load %arg6[%c0_93, %c0_94, %c0_95] : memref<4x56x28xf32, #tpu.memory_space<vmem>>, vector<1x56x28xf32>
    %92 = vector.shape_cast %91 : vector<1x56x28xf32> to vector<56x28xf32>
    %c0_96 = arith.constant 0 : index
    %c0_97 = arith.constant 0 : index
    %c0_98 = arith.constant 0 : index
    %93 = vector.load %arg7[%c0_96, %c0_97, %c0_98] : memref<4x112x28xf32, #tpu.memory_space<vmem>>, vector<1x112x28xf32>
    %94 = vector.shape_cast %93 : vector<1x112x28xf32> to vector<112x28xf32>
    %cst_99 = arith.constant dense<0.000000e+00> : vector<28x28xf32>
    %95 = tpu.matmul %89, %94, %cst_99 {dimension_numbers = #tpu.dot_dimension_numbers<[1], [0], [0], [1], [0, 0, 1, 1], [], []>} : vector<28x112xf32>, vector<112x28xf32>, vector<28x28xf32> -> vector<28x28xf32>
    %cst_100 = arith.constant dense<0.000000e+00> : vector<56x28xf32>
    %96 = tpu.matmul %92, %95, %cst_100 {dimension_numbers = #tpu.dot_dimension_numbers<[1], [0], [0], [1], [0, 0, 1, 1], [], []>} : vector<56x28xf32>, vector<28x28xf32>, vector<56x28xf32> -> vector<56x28xf32>
    %97 = vector.broadcast %90 : vector<1x28xf32> to vector<56x28xf32>
    %98 = arith.addf %97, %96 : vector<56x28xf32>
    %c1_101 = arith.constant 1 : index
    %c0_102 = arith.constant 0 : index
    %c0_103 = arith.constant 0 : index
    %99 = vector.load %arg6[%c1_101, %c0_102, %c0_103] : memref<4x56x28xf32, #tpu.memory_space<vmem>>, vector<1x56x28xf32>
    %100 = vector.shape_cast %99 : vector<1x56x28xf32> to vector<56x28xf32>
    %c1_104 = arith.constant 1 : index
    %c0_105 = arith.constant 0 : index
    %c0_106 = arith.constant 0 : index
    %101 = vector.load %arg7[%c1_104, %c0_105, %c0_106] : memref<4x112x28xf32, #tpu.memory_space<vmem>>, vector<1x112x28xf32>
    %102 = vector.shape_cast %101 : vector<1x112x28xf32> to vector<112x28xf32>
    %cst_107 = arith.constant dense<0.000000e+00> : vector<28x28xf32>
    %103 = tpu.matmul %89, %102, %cst_107 {dimension_numbers = #tpu.dot_dimension_numbers<[1], [0], [0], [1], [0, 0, 1, 1], [], []>} : vector<28x112xf32>, vector<112x28xf32>, vector<28x28xf32> -> vector<28x28xf32>
    %cst_108 = arith.constant dense<0.000000e+00> : vector<56x28xf32>
    %104 = tpu.matmul %100, %103, %cst_108 {dimension_numbers = #tpu.dot_dimension_numbers<[1], [0], [0], [1], [0, 0, 1, 1], [], []>} : vector<56x28xf32>, vector<28x28xf32>, vector<56x28xf32> -> vector<56x28xf32>
    %105 = arith.addf %98, %104 : vector<56x28xf32>
    %c2_109 = arith.constant 2 : index
    %c0_110 = arith.constant 0 : index
    %c0_111 = arith.constant 0 : index
    %106 = vector.load %arg6[%c2_109, %c0_110, %c0_111] : memref<4x56x28xf32, #tpu.memory_space<vmem>>, vector<1x56x28xf32>
    %107 = vector.shape_cast %106 : vector<1x56x28xf32> to vector<56x28xf32>
    %c2_112 = arith.constant 2 : index
    %c0_113 = arith.constant 0 : index
    %c0_114 = arith.constant 0 : index
    %108 = vector.load %arg7[%c2_112, %c0_113, %c0_114] : memref<4x112x28xf32, #tpu.memory_space<vmem>>, vector<1x112x28xf32>
    %109 = vector.shape_cast %108 : vector<1x112x28xf32> to vector<112x28xf32>
    %cst_115 = arith.constant dense<0.000000e+00> : vector<28x28xf32>
    %110 = tpu.matmul %89, %109, %cst_115 {dimension_numbers = #tpu.dot_dimension_numbers<[1], [0], [0], [1], [0, 0, 1, 1], [], []>} : vector<28x112xf32>, vector<112x28xf32>, vector<28x28xf32> -> vector<28x28xf32>
    %cst_116 = arith.constant dense<0.000000e+00> : vector<56x28xf32>
    %111 = tpu.matmul %107, %110, %cst_116 {dimension_numbers = #tpu.dot_dimension_numbers<[1], [0], [0], [1], [0, 0, 1, 1], [], []>} : vector<56x28xf32>, vector<28x28xf32>, vector<56x28xf32> -> vector<56x28xf32>
    %112 = arith.addf %105, %111 : vector<56x28xf32>
    %c3_117 = arith.constant 3 : index
    %c0_118 = arith.constant 0 : index
    %c0_119 = arith.constant 0 : index
    %113 = vector.load %arg6[%c3_117, %c0_118, %c0_119] : memref<4x56x28xf32, #tpu.memory_space<vmem>>, vector<1x56x28xf32>
    %114 = vector.shape_cast %113 : vector<1x56x28xf32> to vector<56x28xf32>
    %c3_120 = arith.constant 3 : index
    %c0_121 = arith.constant 0 : index
    %c0_122 = arith.constant 0 : index
    %115 = vector.load %arg7[%c3_120, %c0_121, %c0_122] : memref<4x112x28xf32, #tpu.memory_space<vmem>>, vector<1x112x28xf32>
    %116 = vector.shape_cast %115 : vector<1x112x28xf32> to vector<112x28xf32>
    %cst_123 = arith.constant dense<0.000000e+00> : vector<28x28xf32>
    %117 = tpu.matmul %89, %116, %cst_123 {dimension_numbers = #tpu.dot_dimension_numbers<[1], [0], [0], [1], [0, 0, 1, 1], [], []>} : vector<28x112xf32>, vector<112x28xf32>, vector<28x28xf32> -> vector<28x28xf32>
    %cst_124 = arith.constant dense<0.000000e+00> : vector<56x28xf32>
    %118 = tpu.matmul %114, %117, %cst_124 {dimension_numbers = #tpu.dot_dimension_numbers<[1], [0], [0], [1], [0, 0, 1, 1], [], []>} : vector<56x28xf32>, vector<28x28xf32>, vector<56x28xf32> -> vector<56x28xf32>
    %119 = arith.addf %112, %118 : vector<56x28xf32>
    %cst_125 = arith.constant 0.000000e+00 : f32
    %120 = vector.broadcast %cst_125 : f32 to vector<56x28xf32>
    %121 = arith.maximumf %119, %120 : vector<56x28xf32>
    %122 = math.tanh %121 : vector<56x28xf32>
    %c0_126 = arith.constant 0 : index
    %c0_127 = arith.constant 0 : index
    %123 = vector.load %arg9[%c0_126, %c0_127] : memref<56x28xf32, #tpu.memory_space<vmem>>, vector<56x28xf32>
    tpu.vector_store %arg9[%c0_126, %c0_127], %122 {strides = array<i32>} : memref<56x28xf32, #tpu.memory_space<vmem>>, vector<56x28xf32>,
    return
  }
}

</mosaic_0001>

<bundles_post_ra>
// kernel: tpu_custom_call.1
= control target key start
LH: loop header
LB: loop body
LE: loop exit
PB: predicated region body
PF: predicated region fallthrough
CT: control target
= control target key end

     0   :  { %vm41_vm0 = vcmask 261120   ;;  %vm65_vm1 = vcmask 910336   ;;  %vm274_vm2 = vcmask 916480   ;;  %vm317_vm3 = vcmask 1045504   ;;  %s2228_s1 = inlined_call_operand.vmem [shape: f32[7,32,112], index: 1, kind: input, shape index: {}]   ;;  %s2229_s0 = inlined_call_operand.vmem [shape: f32[2,32], index: 0, kind: input, shape index: {}]   ;;  %s2230_s4 = inlined_call_operand.vmem [shape: f32[4,112,112], index: 4, kind: input, shape index: {}]   ;;  %s2231_s2 = inlined_call_operand.vmem [shape: f32[7,1,112], index: 2, kind: input, shape index: {}]   ;;  %s2232_s5 = inlined_call_operand.vmem [shape: f32[1,112], index: 5, kind: input, shape index: {}]   ;;  %s2233_s3 = inlined_call_operand.vmem [shape: f32[4,28,14], index: 3, kind: input, shape index: {}]   ;;  %s2234_s7 = inlined_call_operand.vmem [shape: f32[4,112,28], index: 7, kind: input, shape index: {}]   ;;  %s2235_s8 = inlined_call_operand.vmem [shape: f32[1,28], index: 8, kind: input, shape index: {}]   ;;  %s2236_s6 = inlined_call_operand.vmem [shape: f32[4,56,28], index: 6, kind: input, shape index: {}]   ;;  %s2237_s9 = inlined_call_operand.vmem [shape: f32[56,28], index: 9, kind: output, shape index: {}]  }
   0x1   :  { %v36_v0 = vld [vmem:[%s2228_s1 + $0x18] sm:$0xff]  ;;  %v35_v1 = vld [vmem:[%s2228_s1 + $0x10] sm:$0xff]  ;;  %v34_v2 = vld [vmem:[%s2228_s1 + $0x8] sm:$0xff]  ;;  %vm304_vm4 = vcmask 113664   ;;  %vm719_vm5 = vcmask 1043456   ;;  %vm697_vm6 = vcmask 228352  }
   0x2   :  { %57 = vmatpush.msra.mxu2 %v36_v0  ;;  %v1175_v3 = vld [vmem:[%s2228_s1 + $0x78] sm:$0xff]  ;;  %v1174_v4 = vld [vmem:[%s2228_s1 + $0x70] sm:$0xff]  ;;  %v33_v6 = vld [vmem:[%s2228_s1] sm:$0xff] }
   0x3   :  { %151 = vmatpush.msra.mxu3 %v1175_v3  ;;  %v1163_v5 = vld [vmem:[%s2228_s1 + $0x38] sm:$0xff]  ;;  %v1173_v7 = vld [vmem:[%s2228_s1 + $0x68] sm:$0xff]  ;;  %v1162_v8 = vld [vmem:[%s2228_s1 + $0x30] sm:$0xff] }
   0x4   :  { %58 = vmatpush.msra.mxu2 %v35_v1  ;;  %89 = vmatpush.msra.mxu1 %v1163_v5  ;;  %v1492_v9 = vld [vmem:[%s2229_s0] sm:$0x3]  ;;  %v1161_v10 = vld [vmem:[%s2228_s1 + $0x28] sm:$0xff]  ;;  %v1169_v11 = vld [vmem:[%s2228_s1 + $0x58] sm:$0xff] }
   0x5   :  { %152 = vmatpush.msra.mxu3 %v1174_v4  ;;  %v1172_v12 = vld [vmem:[%s2228_s1 + $0x60] sm:$0xff]  ;;  %v1168_v14 = vld [vmem:[%s2228_s1 + $0x50] sm:$0xff]  ;;  %v1181_v15 = vld [vmem:[%s2228_s1 + $0x98] sm:$0xff] }
   0x6   :  { %59 = vmatpush.msra.mxu2 %v34_v2  ;;  %90 = vmatpush.msra.mxu1 %v1162_v8  ;;  %v1160_v13 = vld [vmem:[%s2228_s1 + $0x20] sm:$0xff]  ;;  %v1187_v16 = vld [vmem:[%s2228_s1 + $0xb8] sm:$0xff]  ;;  %v1167_v17 = vld [vmem:[%s2228_s1 + $0x48] sm:$0xff] }
   0x7   :  { %153 = vmatpush.msra.mxu3 %v1173_v7  ;;  %v1180_v18 = vld [vmem:[%s2228_s1 + $0x90] sm:$0xff]  ;;  %v273_v20 = vld [vmem:[%s2230_s4 + $0x68] sm:$0xff]  ;;  %v1166_v21 = vld [vmem:[%s2228_s1 + $0x40] sm:$0xff]  ;;  %182 = vmatpush.msra.mxu0 %v1181_v15 }
   0x8   :  { %60 = vmatpush.msra.mxu2 %v33_v6  ;;  %91 = vmatpush.msra.mxu1 %v1161_v10  ;;  %v1186_v19 = vld [vmem:[%s2228_s1 + $0xb0] sm:$0xff]  ;;  %v1193_v22 = vld [vmem:[%s2228_s1 + $0xd8] sm:$0xff]  ;;  %v272_v23 = vld [vmem:[%s2230_s4 + $0x60] sm:$0xff] }
   0x9   :  { %1159 = vmatmul.msk.f32.vlgmr.msra.gmra.mxu2 %vm41_vm0, %v1492_v9  ;;  %154 = vmatpush.msra.mxu3 %v1172_v12  ;;  %v1179_v24 = vld [vmem:[%s2228_s1 + $0x88] sm:$0xff]  ;;  %v1178_v26 = vld [vmem:[%s2228_s1 + $0x80] sm:$0xff]  ;;  %v1192_v27 = vld [vmem:[%s2228_s1 + $0xd0] sm:$0xff] }
   0xa   :  { %120 = vmatpush.msrb.mxu2 %v1169_v11  ;;  %1177 = vmatmul.msk.f32.vlgmr.msra.gmra.mxu3 %vm41_vm0, %v1492_v9  ;;  %v1185_v25 = vld [vmem:[%s2228_s1 + $0xa8] sm:$0xff]  ;;  %v1184_v28 = vld [vmem:[%s2228_s1 + $0xa0] sm:$0xff]  ;;  %v271_v29 = vld [vmem:[%s2230_s4 + $0x58] sm:$0xff] }
   0xb   :  { %92 = vmatpush.msra.mxu1 %v1160_v13  ;;  %283 = vmatpush.msrb.mxu3 %v273_v20  ;;  %v1191_v30 = vld [vmem:[%s2228_s1 + $0xc8] sm:$0xff]  ;;  %v1220_v31 = vld [vmem:[%s2230_s4 + $0xd8] sm:$0xff]  ;;  %v270_v32 = vld [vmem:[%s2230_s4 + $0x50] sm:$0xff] }
   0xc   :  { %121 = vmatpush.msrb.mxu2 %v1168_v14  ;;  %1165 = vmatmul.msk.f32.vlgmr.msra.gmra.mxu1 %vm41_vm0, %v1492_v9  ;;  %v1190_v33 = vld [vmem:[%s2228_s1 + $0xc0] sm:$0xff]  ;;  %v1219_v34 = vld [vmem:[%s2230_s4 + $0xd0] sm:$0xff]  ;;  %v1218_v35 = vld [vmem:[%s2230_s4 + $0xc8] sm:$0xff] }
   0xd   :  { %213 = vmatpush.msrb.mxu1 %v1187_v16  ;;  %183 = vmatpush.msra.mxu0 %v1180_v18  ;;  %v1217_v36 = vld [vmem:[%s2230_s4 + $0xc0] sm:$0xff]  ;;  %v1216_v37 = vld [vmem:[%s2230_s4 + $0xb8] sm:$0xff]  ;;  %v1215_v38 = vld [vmem:[%s2230_s4 + $0xb0] sm:$0xff] }
   0xe   :  { %122 = vmatpush.msrb.mxu2 %v1167_v17  ;;  %284 = vmatpush.msrb.mxu3 %v272_v23  ;;  %v1214_v39 = vld [vmem:[%s2230_s4 + $0xa8] sm:$0xff]  ;;  %v1213_v40 = vld [vmem:[%s2230_s4 + $0xa0] sm:$0xff]  ;;  %v1212_v41 = vld [vmem:[%s2230_s4 + $0x98] sm:$0xff] }
   0xf   :  { %214 = vmatpush.msrb.mxu1 %v1186_v19  ;;  %184 = vmatpush.msra.mxu0 %v1179_v24  ;;  %v1211_v42 = vld [vmem:[%s2230_s4 + $0x90] sm:$0xff]  ;;  %v269_v43 = vld [vmem:[%s2230_s4 + $0x48] sm:$0xff]  ;;  %v268_v45 = vld [vmem:[%s2230_s4 + $0x40] sm:$0xff] }
  0x10   :  { %123 = vmatpush.msrb.mxu2 %v1166_v21  ;;  %285 = vmatpush.msrb.mxu3 %v271_v29  ;;  %v1210_v44 = vld [vmem:[%s2230_s4 + $0x88] sm:$0xff]  ;;  %v1209_v46 = vld [vmem:[%s2230_s4 + $0x80] sm:$0xff]  ;;  %v267_v47 = vld [vmem:[%s2230_s4 + $0x38] sm:$0xff] }
  0x11   :  { %1171 = vmatmul.msk.f32.vlgmr.msrb.gmra.mxu2 %vm41_vm0, %v1492_v9  ;;  %215 = vmatpush.msrb.mxu1 %v1185_v25  ;;  %v1208_v48 = vld [vmem:[%s2230_s4 + $0x78] sm:$0xff]  ;;  %v266_v49 = vld [vmem:[%s2230_s4 + $0x30] sm:$0xff]  ;;  %v265_v51 = vld [vmem:[%s2230_s4 + $0x28] sm:$0xff] }
  0x12   :  { %244 = vmatpush.msra.mxu2 %v1193_v22  ;;  %185 = vmatpush.msra.mxu0 %v1178_v26  ;;  %v1207_v50 = vld [vmem:[%s2230_s4 + $0x70] sm:$0xff]  ;;  %v1245_v52 = vld [vmem:[%s2230_s4 + $0x148] sm:$0xff]  ;;  %v264_v53 = vld [vmem:[%s2230_s4 + $0x20] sm:$0xff] }
  0x13   :  { %216 = vmatpush.msrb.mxu1 %v1184_v28  ;;  %1183 = vmatmul.msk.f32.vlgmr.msra.gmra.mxu0 %vm41_vm0, %v1492_v9  ;;  %v1244_v54 = vld [vmem:[%s2230_s4 + $0x140] sm:$0xff]  ;;  %v263_v55 = vld [vmem:[%s2230_s4 + $0x18] sm:$0xff]  ;;  %v262_v57 = vld [vmem:[%s2230_s4 + $0x10] sm:$0xff] }
  0x14   :  { %245 = vmatpush.msra.mxu2 %v1192_v27  ;;  %1189 = vmatmul.msk.f32.vlgmr.msrb.gmra.mxu1 %vm41_vm0, %v1492_v9  ;;  %v1243_v56 = vld [vmem:[%s2230_s4 + $0x138] sm:$0xff]  ;;  %v1242_v58 = vld [vmem:[%s2230_s4 + $0x130] sm:$0xff]  ;;  %v261_v59 = vld [vmem:[%s2230_s4 + $0x8] sm:$0xff] }
  0x15   :  { %379 = vmatpush.msra.mxu1 %v1220_v31  ;;  %286 = vmatpush.msrb.mxu3 %v270_v32  ;;  %v1241_v60 = vld [vmem:[%s2230_s4 + $0x128] sm:$0xff]  ;;  %v260_v61 = vld [vmem:[%s2230_s4] sm:$0xff]  ;;  %v1239_v63 = vld [vmem:[%s2230_s4 + $0x118] sm:$0xff] }
  0x16   :  { %246 = vmatpush.msra.mxu2 %v1191_v30  ;;  %v1240_v62 = vld [vmem:[%s2230_s4 + $0x120] sm:$0xff]  ;;  %v1238_v0 = vld [vmem:[%s2230_s4 + $0x110] sm:$0xff]  ;;  %v1237_v1 = vld [vmem:[%s2230_s4 + $0x108] sm:$0xff] }
  0x17   :  { %380 = vmatpush.msra.mxu1 %v1219_v34  ;;  %287 = vmatpush.msrb.mxu3 %v269_v43  ;;  %v1236_v2 = vld [vmem:[%s2230_s4 + $0x100] sm:$0xff]  ;;  %v1235_v4 = vld [vmem:[%s2230_s4 + $0xf8] sm:$0xff]  ;;  %v1234_v5 = vld [vmem:[%s2230_s4 + $0xf0] sm:$0xff] }
  0x18   :  { %247 = vmatpush.msra.mxu2 %v1190_v33  ;;  %v1390_v3 = vld [vmem:[%s2231_s2 + $0x1] ss:$0 sm:$0xff]  ;;  %v1389_v6 = vld [vmem:[%s2231_s2] ss:$0 sm:$0xff]  ;;  %v1233_v8 = vld [vmem:[%s2230_s4 + $0xe8] sm:$0xff] }
  0x19   :  { %1195 = vmatmul.msk.f32.vlgmr.msra.gmra.mxu2 %vm41_vm0, %v1492_v9  ;;  %381 = vmatpush.msra.mxu1 %v1218_v35  ;;  %v1392_v10 = vld [vmem:[%s2231_s2 + $0x3] ss:$0 sm:$0xff]  ;;  %v1393_v16 = vld [vmem:[%s2231_s2 + $0x4] ss:$0 sm:$0xff]  ;;  %v1394_v17 = vld [vmem:[%s2231_s2 + $0x5] ss:$0 sm:$0xff] }
  0x1a   :  { %288 = vmatpush.msrb.mxu3 %v268_v45  ;;  %v1232_v11 = vld [vmem:[%s2230_s4 + $0xe0] sm:$0xff]  ;;  %v1270_v34 = vld [vmem:[%s2230_s4 + $0x1b8] sm:$0xff]  ;;  %v1269_v35 = vld [vmem:[%s2230_s4 + $0x1b0] sm:$0xff] }
  0x1b   :  { %382 = vmatpush.msra.mxu1 %v1217_v36  ;;  %v1391_v18 = vld [vmem:[%s2231_s2 + $0x2] ss:$0 sm:$0xff]  ;;  %v1395_v25 = vld [vmem:[%s2231_s2 + $0x6] ss:$0 sm:$0xff]  ;;  %v1265_v43 = vld [vmem:[%s2230_s4 + $0x190] sm:$0xff] }
  0x1c   :  { %289 = vmatpush.msrb.mxu3 %v267_v47  ;;  %v1203_v33 = vld [vmem:[%s2233_s3 + $0x20] sm:$0xff]  ;;  %v257_v45 = vld [vmem:[%s2233_s3 + $0x8] sm:$0xff] }
  0x1d   :  { %383 = vmatpush.msra.mxu1 %v1216_v37  ;;  %v1268_v37 = vld [vmem:[%s2230_s4 + $0x1a8] sm:$0xff]  ;;  %v1263_v47 = vld [vmem:[%s2230_s4 + $0x180] sm:$0xff] }
  0x1e   :  { %290 = vmatpush.msrb.mxu3 %v266_v49  ;;  %v1228_v49 = vld [vmem:[%s2233_s3 + $0x40] sm:$0xff] }
  0x1f   :  { %384 = vmatpush.msra.mxu1 %v1215_v38  ;;  %v256_v38 = vld [vmem:[%s2233_s3] sm:$0xff] }
  0x20   :  { %291 = vmatpush.msrb.mxu3 %v265_v51  ;;  %v1261_v51 = vld [vmem:[%s2230_s4 + $0x170] sm:$0xff] }
  0x21   :  { %385 = vmatpush.msra.mxu1 %v1214_v39 }
  0x22   :  { %292 = vmatpush.msrb.mxu3 %v264_v53  ;;  %v258_v53 = vld [vmem:[%s2233_s3 + $0x10] sm:$0xff] }
  0x23   :  { %386 = vmatpush.msra.mxu1 %v1213_v40  ;;  %v1267_v40 = vld [vmem:[%s2230_s4 + $0x1a0] sm:$0xff] }
  0x24   :  { %293 = vmatpush.msrb.mxu3 %v263_v55  ;;  %v1206_v55 = vld [vmem:[%s2233_s3 + $0x38] sm:$0xf] }
  0x25   :  { %387 = vmatpush.msra.mxu1 %v1212_v41  ;;  %v1204_v41 = vld [vmem:[%s2233_s3 + $0x28] sm:$0xff] }
  0x26   :  { %294 = vmatpush.msrb.mxu3 %v262_v57  ;;  %v1258_v57 = vld [vmem:[%s2230_s4 + $0x158] sm:$0xff] }
  0x27   :  { %388 = vmatpush.msra.mxu1 %v1211_v42  ;;  %v1266_v42 = vld [vmem:[%s2230_s4 + $0x198] sm:$0xff] }
  0x28   :  { %295 = vmatpush.msrb.mxu3 %v261_v59  ;;  %v259_v59 = vld [vmem:[%s2233_s3 + $0x18] sm:$0xf] }
  0x29   :  { %389 = vmatpush.msra.mxu1 %v1210_v44  ;;  %v1264_v44 = vld [vmem:[%s2230_s4 + $0x188] sm:$0xff] }
  0x2a   :  { %296 = vmatpush.msrb.mxu3 %v260_v61  ;;  %v1231_v61 = vld [vmem:[%s2233_s3 + $0x58] sm:$0xf] }
  0x2b   :  { %390 = vmatpush.msra.mxu1 %v1209_v46 }
  0x2d   :  { %391 = vmatpush.msra.mxu1 %v1208_v48  ;;  %v1205_v48 = vld [vmem:[%s2233_s3 + $0x30] sm:$0xff] }
  0x2f   :  { %392 = vmatpush.msra.mxu1 %v1207_v50  ;;  %v1262_v50 = vld [vmem:[%s2230_s4 + $0x178] sm:$0xff] }
  0x31   :  { %470 = vmatpush.msrb.mxu1 %v1245_v52  ;;  %v1260_v52 = vld [vmem:[%s2230_s4 + $0x168] sm:$0xff] }
  0x33   :  { %471 = vmatpush.msrb.mxu1 %v1244_v54  ;;  %v1259_v54 = vld [vmem:[%s2230_s4 + $0x160] sm:$0xff] }
  0x35   :  { %472 = vmatpush.msrb.mxu1 %v1243_v56  ;;  %v1229_v56 = vld [vmem:[%s2233_s3 + $0x48] sm:$0xff] }
  0x37   :  { %473 = vmatpush.msrb.mxu1 %v1242_v58  ;;  %v1257_v58 = vld [vmem:[%s2230_s4 + $0x150] sm:$0xff] }
  0x39   :  { %474 = vmatpush.msrb.mxu1 %v1241_v60  ;;  %v1230_v60 = vld [vmem:[%s2233_s3 + $0x50] sm:$0xff] }
  0x3b   :  { %475 = vmatpush.msrb.mxu1 %v1240_v62 }
  0x3d   :  { %476 = vmatpush.msrb.mxu1 %v1239_v63 }
  0x3f   :  { %477 = vmatpush.msrb.mxu1 %v1238_v0 }
  0x41   :  { %478 = vmatpush.msrb.mxu1 %v1237_v1 }
  0x43   :  { %479 = vmatpush.msrb.mxu1 %v1236_v2 }
  0x45   :  { %480 = vmatpush.msrb.mxu1 %v1235_v4  ;;  %v1310_v4 = vld [vmem:[%s2234_s7 + $0xd8] sm:$0xff] }
  0x47   :  { %481 = vmatpush.msrb.mxu1 %v1234_v5  ;;  %v654_v5 = vld [vmem:[%s2234_s7 + $0x60] sm:$0xff] }
  0x49   :  { %482 = vmatpush.msrb.mxu1 %v1233_v8  ;;  %v1308_v8 = vld [vmem:[%s2234_s7 + $0xc8] sm:$0xff] }
  0x4b   :  { %483 = vmatpush.msrb.mxu1 %v1232_v11  ;;  %v1253_v11 = vld [vmem:[%s2233_s3 + $0x60] sm:$0xff] }
  0x89   :  { %v94_v7 = vpop.f32.mrf.mxu1 }
  0x8a   :  { %v95_v9 = vadd.f32 %v1390_v3, %v94_v7  ;;  %v655_v3 = vld [vmem:[%s2234_s7 + $0x68] sm:$0xff]  ;;  %v653_v7 = vld [vmem:[%s2234_s7 + $0x58] sm:$0xff] }
  0x8c   :  { %v62_v12 = vpop.f32.mrf.mxu2  ;;  %97 = vst.msk [vmem:[#allocation2 + $0x2] sm:$0x3] %vm65_vm1, %v95_v9 }
  0x8d   :  { %v63_v13 = vadd.f32 %v1389_v6, %v62_v12  ;;  %v156_v14 = vpop.f32.mrf.mxu3  ;;  %v1309_v6 = vld [vmem:[%s2234_s7 + $0xd0] sm:$0xff]  ;;  %v1307_v12 = vld [vmem:[%s2234_s7 + $0xc0] sm:$0xff] }
  0x8e   :  { %v157_v15 = vadd.f32 %v1392_v10, %v156_v14  ;;  %v652_v10 = vld [vmem:[%s2234_s7 + $0x50] sm:$0xff]  ;;  %v1306_v14 = vld [vmem:[%s2234_s7 + $0xb8] sm:$0xff] }
  0x8f   :  { %66 = vst.msk [vmem:[#allocation2] sm:$0x3] %vm65_vm1, %v63_v13  ;;  %v651_v13 = vld [vmem:[%s2234_s7 + $0x48] sm:$0xff] }
  0x90   :  { %159 = vst.msk [vmem:[#allocation2 + $0x6] sm:$0x3] %vm65_vm1, %v157_v15  ;;  %v187_v19 = vpop.f32.mrf.mxu0  ;;  %v650_v15 = vld [vmem:[%s2234_s7 + $0x40] sm:$0xff] }
  0x91   :  { %v218_v20 = vpop.f32.mrf.mxu1  ;;  %v188_v21 = vadd.f32 %v1393_v16, %v187_v19  ;;  %v1305_v16 = vld [vmem:[%s2234_s7 + $0xb0] sm:$0xff] }
  0x92   :  { %v219_v22 = vadd.f32 %v1394_v17, %v218_v20  ;;  %v649_v17 = vld [vmem:[%s2234_s7 + $0x38] sm:$0xff]  ;;  %v648_v19 = vld [vmem:[%s2234_s7 + $0x30] sm:$0xff]  ;;  %v1254_v20 = vld [vmem:[%s2233_s3 + $0x68] sm:$0xff] }
  0x93   :  { %190 = vst.msk [vmem:[#allocation2 + $0x8] sm:$0x3] %vm65_vm1, %v188_v21  ;;  %v1303_v21 = vld [vmem:[%s2234_s7 + $0xa0] sm:$0xff] }
  0x94   :  { %v125_v23 = vpop.f32.mrf.mxu2  ;;  %221 = vst.msk [vmem:[#allocation2 + $0xa] sm:$0x3] %vm65_vm1, %v219_v22  ;;  %v647_v22 = vld [vmem:[%s2234_s7 + $0x28] sm:$0xff] }
  0x95   :  { %v126_v24 = vadd.f32 %v1391_v18, %v125_v23  ;;  %v1304_v18 = vld [vmem:[%s2234_s7 + $0xa8] sm:$0xff]  ;;  %v1302_v23 = vld [vmem:[%s2234_s7 + $0x98] sm:$0xff] }
  0x97   :  { %128 = vst.msk [vmem:[#allocation2 + $0x4] sm:$0x3] %vm65_vm1, %v126_v24  ;;  %v646_v24 = vld [vmem:[%s2234_s7 + $0x20] sm:$0xff] }
  0x9c   :  { %v249_v26 = vpop.f32.mrf.mxu2 }
  0x9d   :  { %v250_v27 = vadd.f32 %v1395_v25, %v249_v26  ;;  %v1301_v25 = vld [vmem:[%s2234_s7 + $0x90] sm:$0xff]  ;;  %v645_v26 = vld [vmem:[%s2234_s7 + $0x18] sm:$0xff] }
  0x9e   :  { %v1718_v28 = vld [vmem:[#allocation2] sm:$0xff] }
  0x9f   :  { %252 = vst.msk [vmem:[#allocation2 + $0xc] sm:$0x3] %vm65_vm1, %v250_v27  ;;  %1196 = vmatmul.msk.f32.vlgmr.msrb.gmra.mxu3 %vm274_vm2, %v1718_v28  ;;  %1221 = vmatmul.msk.f32.vlgmr.msra.gmra.mxu1 %vm274_vm2, %v1718_v28  ;;  %v1300_v27 = vld [vmem:[%s2234_s7 + $0x88] sm:$0xff] }
  0xa6   :  { %v1725_v29 = vld [vmem:[#allocation2 + $0x8] sm:$0x3f] }
  0xa7   :  { %1197 = vmatmul.msk.f32.gmra.mxu3 %vm274_vm2, %v1725_v29  ;;  %1222 = vmatmul.msk.f32.gmra.mxu1 %vm274_vm2, %v1725_v29 }
  0xaf   :  { %1246 = vmatmul.msk.f32.vlgmr.msrb.gmra.mxu1 %vm274_vm2, %v1718_v28 }
  0xb7   :  { %1247 = vmatmul.msk.f32.gmra.mxu1 %vm274_vm2, %v1725_v29 }
 0x11c   :  { %v394_v30 = vpop.f32.mrf.mxu1 }
 0x122   :  { %v298_v31 = vpop.f32.mrf.mxu3 }
 0x124   :  { %v397_v32 = vpop.f32.mrf.mxu1 }
 0x125   :  { %1223 = vmatpush.msk.msrb.mxu2 %vm317_vm3, %v397_v32  ;;  %v643_v32 = vld [vmem:[%s2234_s7 + $0x8] sm:$0xff] }
 0x127   :  { %430 = vmatpush.msrb.mxu2 %v394_v30  ;;  %v644_v30 = vld [vmem:[%s2234_s7 + $0x10] sm:$0xff] }
 0x128   :  { %1224 = vmatmul.msk.f32.vlgmr.msrb.gmra.mxu2 %vm304_vm4, %v1203_v33  ;;  %v1298_v33 = vld [vmem:[%s2234_s7 + $0x78] sm:$0xff] }
 0x129   :  { %561 = vmatpush.msra.mxu2 %v1270_v34  ;;  %v642_v34 = vld [vmem:[%s2234_s7] sm:$0xff] }
 0x12a   :  { %v301_v36 = vpop.f32.mrf.mxu3 }
 0x12b   :  { %1198 = vmatpush.msk.msrb.mxu0 %vm317_vm3, %v301_v36  ;;  %562 = vmatpush.msra.mxu2 %v1269_v35  ;;  %v1297_v35 = vld [vmem:[%s2234_s7 + $0x70] sm:$0xff]  ;;  %v1343_v36 = vld [vmem:[%s2234_s7 + $0x148] sm:$0xff] }
 0x12c   :  { %v485_v39 = vpop.f32.mrf.mxu1 }
 0x12d   :  { %336 = vmatpush.msrb.mxu0 %v298_v31  ;;  %563 = vmatpush.msra.mxu2 %v1268_v37  ;;  %v1299_v31 = vld [vmem:[%s2234_s7 + $0x80] sm:$0xff] }
 0x12e   :  { %1199 = vmatmul.msk.f32.vlgmr.msrb.gmra.mxu0 %vm304_vm4, %v256_v38  ;;  %v1342_v37 = vld [vmem:[%s2234_s7 + $0x140] sm:$0xff]  ;;  %v1341_v38 = vld [vmem:[%s2234_s7 + $0x138] sm:$0xff] }
 0x12f   :  { %564 = vmatpush.msra.mxu2 %v1267_v40  ;;  %670 = vmatpush.msra.mxu0 %v655_v3  ;;  %v1340_v40 = vld [vmem:[%s2234_s7 + $0x130] sm:$0xff] }
 0x130   :  { %1225 = vmatmul.msk.f32.gmra.mxu2 %vm304_vm4, %v1204_v41  ;;  %v1339_v41 = vld [vmem:[%s2234_s7 + $0x128] sm:$0xff] }
 0x131   :  { %565 = vmatpush.msra.mxu2 %v1266_v42  ;;  %671 = vmatpush.msra.mxu0 %v654_v5  ;;  %v1338_v42 = vld [vmem:[%s2234_s7 + $0x120] sm:$0xff] }
 0x133   :  { %566 = vmatpush.msra.mxu2 %v1265_v43  ;;  %672 = vmatpush.msra.mxu0 %v653_v7  ;;  %v1396_v43 = vld [vmem:[%s2232_s5] ss:$0 sm:$0xff] }
 0x134   :  { %v488_v46 = vpop.f32.mrf.mxu1 }
 0x135   :  { %1248 = vmatpush.msk.msra.mxu3 %vm317_vm3, %v488_v46  ;;  %567 = vmatpush.msra.mxu2 %v1264_v44  ;;  %v1337_v44 = vld [vmem:[%s2234_s7 + $0x118] sm:$0xff]  ;;  %v1336_v46 = vld [vmem:[%s2234_s7 + $0x110] sm:$0xff] }
 0x136   :  { %1200 = vmatmul.msk.f32.gmra.mxu0 %vm304_vm4, %v257_v45 }
 0x137   :  { %521 = vmatpush.msra.mxu3 %v485_v39  ;;  %568 = vmatpush.msra.mxu2 %v1263_v47 }
 0x138   :  { %1226 = vmatmul.msk.f32.gmra.mxu2 %vm304_vm4, %v1205_v48  ;;  %1249 = vmatmul.msk.f32.vlgmr.msra.gmra.mxu3 %vm304_vm4, %v1228_v49  ;;  %v1335_v49 = vld [vmem:[%s2234_s7 + $0x108] sm:$0xff] }
 0x139   :  { %569 = vmatpush.msra.mxu2 %v1262_v50  ;;  %796 = vmatpush.msrb.mxu3 %v1310_v4  ;;  %v1334_v50 = vld [vmem:[%s2234_s7 + $0x100] sm:$0xff] }
 0x13a   :  { %673 = vmatpush.msra.mxu0 %v652_v10 }
 0x13b   :  { %570 = vmatpush.msra.mxu2 %v1261_v51  ;;  %797 = vmatpush.msrb.mxu3 %v1309_v6 }
 0x13c   :  { %674 = vmatpush.msra.mxu0 %v651_v13 }
 0x13d   :  { %571 = vmatpush.msra.mxu2 %v1260_v52  ;;  %798 = vmatpush.msrb.mxu3 %v1308_v8  ;;  %v1333_v52 = vld [vmem:[%s2234_s7 + $0xf8] sm:$0xff] }
 0x13e   :  { %1201 = vmatmul.msk.f32.gmra.mxu0 %vm304_vm4, %v258_v53  ;;  %v1332_v53 = vld [vmem:[%s2234_s7 + $0xf0] sm:$0xff] }
 0x13f   :  { %572 = vmatpush.msra.mxu2 %v1259_v54  ;;  %799 = vmatpush.msrb.mxu3 %v1307_v12 }
 0x140   :  { %1227 = vmatmul.msk.f32.gmra.mxu2 %vm304_vm4, %v1206_v55  ;;  %1250 = vmatmul.msk.f32.gmra.mxu3 %vm304_vm4, %v1229_v56 }
 0x141   :  { %573 = vmatpush.msra.mxu2 %v1258_v57  ;;  %800 = vmatpush.msrb.mxu3 %v1306_v14  ;;  %v1331_v57 = vld [vmem:[%s2234_s7 + $0xe8] sm:$0xff] }
 0x142   :  { %675 = vmatpush.msra.mxu0 %v650_v15 }
 0x143   :  { %574 = vmatpush.msra.mxu2 %v1257_v58  ;;  %801 = vmatpush.msrb.mxu3 %v1305_v16 }
 0x144   :  { %676 = vmatpush.msra.mxu0 %v649_v17 }
 0x145   :  { %802 = vmatpush.msrb.mxu3 %v1304_v18 }
 0x146   :  { %1202 = vmatmul.msk.f32.gmra.mxu0 %vm304_vm4, %v259_v59 }
 0x147   :  { %677 = vmatpush.msra.mxu0 %v648_v19  ;;  %803 = vmatpush.msrb.mxu3 %v1303_v21 }
 0x148   :  { %1251 = vmatmul.msk.f32.gmra.mxu3 %vm304_vm4, %v1230_v60  ;;  %1271 = vmatmul.msk.f32.vlgmr.msra.gmra.mxu2 %vm274_vm2, %v1718_v28  ;;  %v1255_v28 = vld [vmem:[%s2233_s3 + $0x70] sm:$0xff] }
 0x149   :  { %678 = vmatpush.msra.mxu0 %v647_v22  ;;  %804 = vmatpush.msrb.mxu3 %v1302_v23 }
 0x14b   :  { %679 = vmatpush.msra.mxu0 %v646_v24  ;;  %805 = vmatpush.msrb.mxu3 %v1301_v25 }
 0x14d   :  { %680 = vmatpush.msra.mxu0 %v645_v26  ;;  %806 = vmatpush.msrb.mxu3 %v1300_v27  ;;  %v635_v26 = vld [vmem:[%s2236_s6] sm:$0xff] }
 0x14f   :  { %681 = vmatpush.msra.mxu0 %v644_v30  ;;  %807 = vmatpush.msrb.mxu3 %v1299_v31  ;;  %v1375_v30 = vld [vmem:[%s2234_s7 + $0x1b0] sm:$0xff]  ;;  %v1374_v31 = vld [vmem:[%s2234_s7 + $0x1a8] sm:$0xff] }
 0x150   :  { %1252 = vmatmul.msk.f32.gmra.mxu3 %vm304_vm4, %v1231_v61  ;;  %1272 = vmatmul.msk.f32.gmra.mxu2 %vm274_vm2, %v1725_v29  ;;  %v1256_v29 = vld [vmem:[%s2233_s3 + $0x78] sm:$0xf]  ;;  %v1330_v61 = vld [vmem:[%s2234_s7 + $0xe0] sm:$0xff] }
 0x151   :  { %682 = vmatpush.msra.mxu0 %v643_v32  ;;  %808 = vmatpush.msrb.mxu3 %v1298_v33  ;;  %v1290_v32 = vld [vmem:[%s2236_s6 + $0x38] sm:$0xff]  ;;  %v1373_v33 = vld [vmem:[%s2234_s7 + $0x1a0] sm:$0xff] }
 0x153   :  { %683 = vmatpush.msra.mxu0 %v642_v34  ;;  %809 = vmatpush.msrb.mxu3 %v1297_v35  ;;  %v636_v34 = vld [vmem:[%s2236_s6 + $0x8] sm:$0xff]  ;;  %v1372_v35 = vld [vmem:[%s2234_s7 + $0x198] sm:$0xff] }
 0x155   :  { %917 = vmatpush.msrb.mxu0 %v1343_v36 }
 0x157   :  { %918 = vmatpush.msrb.mxu0 %v1342_v37  ;;  %v1371_v37 = vld [vmem:[%s2234_s7 + $0x190] sm:$0xff] }
 0x159   :  { %919 = vmatpush.msrb.mxu0 %v1341_v38  ;;  %v1370_v38 = vld [vmem:[%s2234_s7 + $0x188] sm:$0xff] }
 0x15b   :  { %920 = vmatpush.msrb.mxu0 %v1340_v40  ;;  %v1369_v40 = vld [vmem:[%s2234_s7 + $0x180] sm:$0xff] }
 0x15d   :  { %921 = vmatpush.msrb.mxu0 %v1339_v41  ;;  %v637_v41 = vld [vmem:[%s2236_s6 + $0x10] sm:$0xff] }
 0x15f   :  { %922 = vmatpush.msrb.mxu0 %v1338_v42  ;;  %v1368_v42 = vld [vmem:[%s2234_s7 + $0x178] sm:$0xff] }
 0x161   :  { %923 = vmatpush.msrb.mxu0 %v1337_v44  ;;  %v1367_v44 = vld [vmem:[%s2234_s7 + $0x170] sm:$0xff] }
 0x163   :  { %924 = vmatpush.msrb.mxu0 %v1336_v46  ;;  %v1292_v46 = vld [vmem:[%s2236_s6 + $0x48] sm:$0xff] }
 0x165   :  { %925 = vmatpush.msrb.mxu0 %v1335_v49  ;;  %v1364_v49 = vld [vmem:[%s2234_s7 + $0x158] sm:$0xff] }
 0x167   :  { %926 = vmatpush.msrb.mxu0 %v1334_v50 }
 0x169   :  { %927 = vmatpush.msrb.mxu0 %v1333_v52  ;;  %v1293_v52 = vld [vmem:[%s2236_s6 + $0x50] sm:$0xff] }
 0x16b   :  { %928 = vmatpush.msrb.mxu0 %v1332_v53  ;;  %v639_v53 = vld [vmem:[%s2236_s6 + $0x20] sm:$0xff] }
 0x16d   :  { %929 = vmatpush.msrb.mxu0 %v1331_v57  ;;  %v1324_v57 = vld [vmem:[%s2236_s6 + $0x78] sm:$0xff] }
 0x16f   :  { %930 = vmatpush.msrb.mxu0 %v1330_v61  ;;  %v1325_v61 = vld [vmem:[%s2236_s6 + $0x80] sm:$0xff] }
 0x1ab   :  { %v1832_v62 = vpop.f32.mrf.mxu2  ;;  %v338_v39 = vpop.f32.mrf.mxu0 }
 0x1ac   :  { %v353_v47 = vadd.f32 %v1396_v43, %v338_v39  ;;  %v1291_v39 = vld [vmem:[%s2236_s6 + $0x40] sm:$0xff] }
 0x1ae   :  { %v444_v51 = vadd.f32 %v1832_v62, %v353_v47  ;;  %v1365_v47 = vld [vmem:[%s2234_s7 + $0x160] sm:$0xff] }
 0x1b3   :  { %v1834_v63 = vpop.f32.mrf.mxu2  ;;  %v341_v48 = vpop.f32.mrf.mxu0 }
 0x1b4   :  { %v354_v58 = vadd.f32 %v1396_v43, %v341_v48  ;;  %v638_v48 = vld [vmem:[%s2236_s6 + $0x18] sm:$0xff] }
 0x1bb   :  { %v1836_v0 = vpop.f32.mrf.mxu2  ;;  %v523_v45 = vpop.f32.mrf.mxu3 }
 0x1bc   :  { %v535_v54 = vadd.f32 %v523_v45, %v444_v51  ;;  %v344_v62 = vpop.f32.mrf.mxu0  ;;  %v1366_v45 = vld [vmem:[%s2234_s7 + $0x168] sm:$0xff]  ;;  %v1363_v51 = vld [vmem:[%s2234_s7 + $0x150] sm:$0xff] }
 0x1bd   :  { %v355_v5 = vadd.f32 %v1396_v43, %v344_v62  ;;  %v1296_v62 = vld [vmem:[%s2236_s6 + $0x68] sm:$0xff] }
 0x1c3   :  { %v1838_v1 = vpop.f32.mrf.mxu2  ;;  %v526_v55 = vpop.f32.mrf.mxu3 }
 0x1cb   :  { %v576_v2 = vpop.f32.mrf.mxu2  ;;  %v529_v7 = vpop.f32.mrf.mxu3 }
 0x1d3   :  { %v579_v9 = vpop.f32.mrf.mxu2  ;;  %v532_v15 = vpop.f32.mrf.mxu3 }
 0x1d4   :  { %1273 = vmatpush.msk.msra.mxu1 %vm317_vm3, %v579_v9  ;;  %v446_v9 = vadd.f32 %v1836_v0, %v355_v5 }
 0x1d6   :  { %612 = vmatpush.msra.mxu1 %v576_v2  ;;  %v445_v2 = vadd.f32 %v1834_v63, %v354_v58  ;;  %v347_v63 = vpop.f32.mrf.mxu0  ;;  %v537_v10 = vadd.f32 %v529_v7, %v446_v9  ;;  %v1295_v58 = vld [vmem:[%s2236_s6 + $0x60] sm:$0xff] }
 0x1d7   :  { %1274 = vmatmul.msk.f32.vlgmr.msra.gmra.mxu1 %vm304_vm4, %v1253_v11  ;;  %v356_v12 = vadd.f32 %v1396_v43, %v347_v63 }
 0x1d8   :  { %v536_v3 = vadd.f32 %v526_v55, %v445_v2  ;;  %v1294_v55 = vld [vmem:[%s2236_s6 + $0x58] sm:$0xff]  ;;  %v1326_v2 = vld [vmem:[%s2236_s6 + $0x88] sm:$0xff] }
 0x1d9   :  { %v447_v16 = vadd.f32 %v1838_v1, %v356_v12 }
 0x1db   :  { %v538_v0 = vadd.f32 %v532_v15, %v447_v16  ;;  %v1356_v15 = vld [vmem:[%s2236_s6 + $0xa8] sm:$0xff]  ;;  %v1357_v16 = vld [vmem:[%s2236_s6 + $0xb0] sm:$0xff] }
 0x1df   :  { %1275 = vmatmul.msk.f32.gmra.mxu1 %vm304_vm4, %v1254_v20 }
 0x1e7   :  { %1276 = vmatmul.msk.f32.gmra.mxu1 %vm304_vm4, %v1255_v28  ;;  %v1376_v28 = vld [vmem:[%s2234_s7 + $0x1b8] sm:$0xff] }
 0x1ef   :  { %1277 = vmatmul.msk.f32.gmra.mxu1 %vm304_vm4, %v1256_v29 }
 0x254   :  { %v614_v56 = vpop.f32.mrf.mxu1 }
 0x255   :  { %v626_v59 = vadd.f32 %v614_v56, %v535_v54  ;;  %v1323_v54 = vld [vmem:[%s2236_s6 + $0x70] sm:$0xff]  ;;  %v640_v56 = vld [vmem:[%s2236_s6 + $0x28] sm:$0xff] }
 0x257   :  { %v1984_v60 = vmax.f32 %v626_v59, 0.0  ;;  %v641_v59 = vld [vmem:[%s2236_s6 + $0x30] sm:$0xff] }
 0x259   :  { %1278 = vmatmul.msk.f32.vlgmr.msra.gmra.mxu0 %vm274_vm2, %v1984_v60  ;;  %1311 = vmatmul.msk.f32.vlgmr.msrb.gmra.mxu3 %vm274_vm2, %v1984_v60 }
 0x25c   :  { %v617_v4 = vpop.f32.mrf.mxu1 }
 0x25d   :  { %v627_v6 = vadd.f32 %v617_v4, %v536_v3  ;;  %v1327_v3 = vld [vmem:[%s2236_s6 + $0x90] sm:$0xff]  ;;  %v1328_v4 = vld [vmem:[%s2236_s6 + $0x98] sm:$0xff] }
 0x25f   :  { %v1994_v8 = vmax.f32 %v627_v6, 0.0 }
 0x261   :  { %1279 = vmatmul.msk.f32.gmra.mxu0 %vm274_vm2, %v1994_v8  ;;  %1312 = vmatmul.msk.f32.gmra.mxu3 %vm274_vm2, %v1994_v8 }
 0x264   :  { %v620_v11 = vpop.f32.mrf.mxu1 }
 0x265   :  { %v628_v13 = vadd.f32 %v620_v11, %v537_v10 }
 0x267   :  { %v2001_v14 = vmax.f32 %v628_v13, 0.0 }
 0x269   :  { %1280 = vmatmul.msk.f32.gmra.mxu0 %vm274_vm2, %v2001_v14  ;;  %1313 = vmatmul.msk.f32.gmra.mxu3 %vm274_vm2, %v2001_v14 }
 0x26c   :  { %v623_v17 = vpop.f32.mrf.mxu1 }
 0x26d   :  { %v629_v18 = vadd.f32 %v623_v17, %v538_v0  ;;  %v1358_v0 = vld [vmem:[%s2236_s6 + $0xb8] sm:$0xff]  ;;  %v1359_v17 = vld [vmem:[%s2236_s6 + $0xc0] sm:$0xff] }
 0x26f   :  { %v2008_v19 = vmax.f32 %v629_v18, 0.0  ;;  %v1360_v18 = vld [vmem:[%s2236_s6 + $0xc8] sm:$0xff] }
 0x271   :  { %1281 = vmatmul.msk.f32.gmra.mxu0 %vm274_vm2, %v2008_v19  ;;  %1314 = vmatmul.msk.f32.gmra.mxu3 %vm274_vm2, %v2008_v19 }
 0x279   :  { %1344 = vmatmul.msk.f32.vlgmr.msrb.gmra.mxu0 %vm274_vm2, %v1984_v60 }
 0x281   :  { %1345 = vmatmul.msk.f32.gmra.mxu0 %vm274_vm2, %v1994_v8 }
 0x289   :  { %1346 = vmatmul.msk.f32.gmra.mxu0 %vm274_vm2, %v2001_v14 }
 0x291   :  { %1347 = vmatmul.msk.f32.gmra.mxu0 %vm274_vm2, %v2008_v19 }
 0x2d6   :  { %v685_v1 = vpop.f32.mrf.mxu0 }
 0x2dc   :  { %v811_v20 = vpop.f32.mrf.mxu3 }
 0x2de   :  { %v688_v21 = vpop.f32.mrf.mxu0 }
 0x2e4   :  { %v814_v22 = vpop.f32.mrf.mxu3 }
 0x2e6   :  { %v691_v23 = vpop.f32.mrf.mxu0 }
 0x2ec   :  { %v817_v24 = vpop.f32.mrf.mxu3 }
 0x2ee   :  { %v694_v25 = vpop.f32.mrf.mxu0 }
 0x2ef   :  { %1282 = vmatpush.msk.msrb.mxu2 %vm719_vm5, %v694_v25 }
 0x2f1   :  { %736 = vmatpush.msrb.mxu2 %v691_v23 }
 0x2f3   :  { %737 = vmatpush.msrb.mxu2 %v688_v21 }
 0x2f4   :  { %v820_v27 = vpop.f32.mrf.mxu3 }
 0x2f5   :  { %738 = vmatpush.msrb.mxu2 %v685_v1  ;;  %1315 = vmatpush.msk.msrb.mxu1 %vm719_vm5, %v820_v27  ;;  %v1362_v1 = vld [vmem:[%s2236_s6 + $0xd8] sm:$0xff] }
 0x2f6   :  { %1283 = vmatmul.msk.f32.vlgmr.msrb.gmra.mxu2 %vm697_vm6, %v635_v26  ;;  %v932_v29 = vpop.f32.mrf.mxu0 }
 0x2f7   :  { %860 = vmatpush.msrb.mxu1 %v817_v24  ;;  %1038 = vmatpush.msra.mxu2 %v1376_v28 }
 0x2f9   :  { %861 = vmatpush.msrb.mxu1 %v814_v22  ;;  %1039 = vmatpush.msra.mxu2 %v1375_v30  ;;  %v1397_v22 = vld [vmem:[%s2235_s8] ss:$0 sm:$0xff] }
 0x2fb   :  { %862 = vmatpush.msrb.mxu1 %v811_v20  ;;  %1040 = vmatpush.msra.mxu2 %v1374_v31 }
 0x2fc   :  { %1316 = vmatmul.msk.f32.vlgmr.msrb.gmra.mxu1 %vm697_vm6, %v1290_v32 }
 0x2fd   :  { %1041 = vmatpush.msra.mxu2 %v1373_v33 }
 0x2fe   :  { %1284 = vmatmul.msk.f32.gmra.mxu2 %vm697_vm6, %v636_v34  ;;  %v935_v36 = vpop.f32.mrf.mxu0 }
 0x2ff   :  { %1042 = vmatpush.msra.mxu2 %v1372_v35 }
 0x301   :  { %1043 = vmatpush.msra.mxu2 %v1371_v37 }
 0x303   :  { %1044 = vmatpush.msra.mxu2 %v1370_v38 }
 0x304   :  { %1317 = vmatmul.msk.f32.gmra.mxu1 %vm697_vm6, %v1291_v39 }
 0x305   :  { %1045 = vmatpush.msra.mxu2 %v1369_v40 }
 0x306   :  { %1285 = vmatmul.msk.f32.gmra.mxu2 %vm697_vm6, %v637_v41  ;;  %v938_v43 = vpop.f32.mrf.mxu0 }
 0x307   :  { %1046 = vmatpush.msra.mxu2 %v1368_v42 }
 0x309   :  { %1047 = vmatpush.msra.mxu2 %v1367_v44 }
 0x30b   :  { %1048 = vmatpush.msra.mxu2 %v1366_v45 }
 0x30c   :  { %1318 = vmatmul.msk.f32.gmra.mxu1 %vm697_vm6, %v1292_v46 }
 0x30d   :  { %1049 = vmatpush.msra.mxu2 %v1365_v47 }
 0x30e   :  { %1286 = vmatmul.msk.f32.gmra.mxu2 %vm697_vm6, %v638_v48  ;;  %v941_v50 = vpop.f32.mrf.mxu0 }
 0x30f   :  { %1348 = vmatpush.msk.msra.mxu3 %vm719_vm5, %v941_v50  ;;  %1050 = vmatpush.msra.mxu2 %v1364_v49 }
 0x311   :  { %981 = vmatpush.msra.mxu3 %v938_v43  ;;  %1051 = vmatpush.msra.mxu2 %v1363_v51 }
 0x313   :  { %982 = vmatpush.msra.mxu3 %v935_v36 }
 0x314   :  { %1319 = vmatmul.msk.f32.gmra.mxu1 %vm697_vm6, %v1293_v52 }
 0x315   :  { %983 = vmatpush.msra.mxu3 %v932_v29 }
 0x316   :  { %1287 = vmatmul.msk.f32.gmra.mxu2 %vm697_vm6, %v639_v53  ;;  %1349 = vmatmul.msk.f32.vlgmr.msra.gmra.mxu3 %vm697_vm6, %v1323_v54 }
 0x31c   :  { %1320 = vmatmul.msk.f32.gmra.mxu1 %vm697_vm6, %v1294_v55 }
 0x31e   :  { %1288 = vmatmul.msk.f32.gmra.mxu2 %vm697_vm6, %v640_v56  ;;  %1350 = vmatmul.msk.f32.gmra.mxu3 %vm697_vm6, %v1324_v57 }
 0x324   :  { %1321 = vmatmul.msk.f32.gmra.mxu1 %vm697_vm6, %v1295_v58 }
 0x326   :  { %1289 = vmatmul.msk.f32.gmra.mxu2 %vm697_vm6, %v641_v59  ;;  %1351 = vmatmul.msk.f32.gmra.mxu3 %vm697_vm6, %v1325_v61 }
 0x32c   :  { %1322 = vmatmul.msk.f32.gmra.mxu1 %vm697_vm6, %v1296_v62 }
 0x32e   :  { %1352 = vmatmul.msk.f32.gmra.mxu3 %vm697_vm6, %v1326_v2  ;;  %1377 = vmatmul.msk.f32.vlgmr.msra.gmra.mxu2 %vm274_vm2, %v1984_v60  ;;  %v1329_v60 = vld [vmem:[%s2236_s6 + $0xa0] sm:$0xff] }
 0x336   :  { %1353 = vmatmul.msk.f32.gmra.mxu3 %vm697_vm6, %v1327_v3  ;;  %1378 = vmatmul.msk.f32.gmra.mxu2 %vm274_vm2, %v1994_v8 }
 0x33e   :  { %1354 = vmatmul.msk.f32.gmra.mxu3 %vm697_vm6, %v1328_v4  ;;  %1379 = vmatmul.msk.f32.gmra.mxu2 %vm274_vm2, %v2001_v14 }
 0x346   :  { %1355 = vmatmul.msk.f32.gmra.mxu3 %vm697_vm6, %v1329_v60  ;;  %1380 = vmatmul.msk.f32.gmra.mxu2 %vm274_vm2, %v2008_v19  ;;  %v1361_v19 = vld [vmem:[%s2236_s6 + $0xd0] sm:$0xff] }
 0x379   :  { %v740_v5 = vpop.f32.mrf.mxu2  ;;  %v864_v20 = vpop.f32.mrf.mxu1 }
 0x37a   :  { %v764_v24 = vadd.f32 %v1397_v22, %v740_v5 }
 0x37c   :  { %v885_v26 = vadd.f32 %v864_v20, %v764_v24 }
 0x381   :  { %v743_v6 = vpop.f32.mrf.mxu2  ;;  %v867_v23 = vpop.f32.mrf.mxu1 }
 0x382   :  { %v765_v29 = vadd.f32 %v1397_v22, %v743_v6 }
 0x384   :  { %v886_v34 = vadd.f32 %v867_v23, %v765_v29 }
 0x389   :  { %v746_v7 = vpop.f32.mrf.mxu2  ;;  %v870_v31 = vpop.f32.mrf.mxu1 }
 0x38a   :  { %v766_v37 = vadd.f32 %v1397_v22, %v746_v7 }
 0x38c   :  { %v887_v42 = vadd.f32 %v870_v31, %v766_v37 }
 0x391   :  { %v749_v8 = vpop.f32.mrf.mxu2  ;;  %v873_v41 = vpop.f32.mrf.mxu1 }
 0x392   :  { %v767_v46 = vadd.f32 %v1397_v22, %v749_v8 }
 0x394   :  { %v888_v50 = vadd.f32 %v873_v41, %v767_v46 }
 0x399   :  { %v2159_v9 = vpop.f32.mrf.mxu2  ;;  %v985_v21 = vpop.f32.mrf.mxu3 }
 0x39a   :  { %v1006_v27 = vadd.f32 %v985_v21, %v885_v26  ;;  %v876_v51 = vpop.f32.mrf.mxu1  ;;  %v768_v55 = vadd.f32 %v1397_v22, %v2159_v9 }
 0x39c   :  { %v889_v59 = vadd.f32 %v876_v51, %v768_v55 }
 0x3a1   :  { %v2161_v63 = vpop.f32.mrf.mxu2  ;;  %v988_v25 = vpop.f32.mrf.mxu3 }
 0x3a2   :  { %v1007_v35 = vadd.f32 %v988_v25, %v886_v34  ;;  %v879_v62 = vpop.f32.mrf.mxu1  ;;  %v769_v3 = vadd.f32 %v1397_v22, %v2161_v63 }
 0x3a4   :  { %v890_v7 = vadd.f32 %v879_v62, %v769_v3 }
 0x3a9   :  { %v2163_v10 = vpop.f32.mrf.mxu2  ;;  %v991_v33 = vpop.f32.mrf.mxu3 }
 0x3aa   :  { %v1008_v44 = vadd.f32 %v991_v33, %v887_v42 }
 0x3b1   :  { %v1053_v11 = vpop.f32.mrf.mxu2  ;;  %v994_v43 = vpop.f32.mrf.mxu3 }
 0x3b2   :  { %v1009_v52 = vadd.f32 %v994_v43, %v888_v50 }
 0x3b9   :  { %v1056_v12 = vpop.f32.mrf.mxu2  ;;  %v997_v53 = vpop.f32.mrf.mxu3 }
 0x3ba   :  { %v1010_v61 = vadd.f32 %v997_v53, %v889_v59 }
 0x3c1   :  { %v1059_v13 = vpop.f32.mrf.mxu2  ;;  %v1000_v60 = vpop.f32.mrf.mxu3 }
 0x3c2   :  { %v1011_v8 = vadd.f32 %v1000_v60, %v890_v7 }
 0x3c9   :  { %v1062_v14 = vpop.f32.mrf.mxu2  ;;  %v1003_v63 = vpop.f32.mrf.mxu3 }
 0x3ca   :  { %1381 = vmatpush.msk.msra.mxu0 %vm719_vm5, %v1062_v14 }
 0x3cc   :  { %1102 = vmatpush.msra.mxu0 %v1059_v13  ;;  %v882_v13 = vpop.f32.mrf.mxu1 }
 0x3ce   :  { %1103 = vmatpush.msra.mxu0 %v1056_v12 }
 0x3d0   :  { %1104 = vmatpush.msra.mxu0 %v1053_v11  ;;  %v770_v11 = vadd.f32 %v1397_v22, %v2163_v10 }
 0x3d1   :  { %1382 = vmatmul.msk.f32.vlgmr.msra.gmra.mxu0 %vm697_vm6, %v1356_v15 }
 0x3d9   :  { %1383 = vmatmul.msk.f32.gmra.mxu0 %vm697_vm6, %v1357_v16  ;;  %v891_v16 = vadd.f32 %v882_v13, %v770_v11 }
 0x3e1   :  { %1384 = vmatmul.msk.f32.gmra.mxu0 %vm697_vm6, %v1358_v0  ;;  %v1012_v0 = vadd.f32 %v1003_v63, %v891_v16 }
 0x3e9   :  { %1385 = vmatmul.msk.f32.gmra.mxu0 %vm697_vm6, %v1359_v17 }
 0x3f1   :  { %1386 = vmatmul.msk.f32.gmra.mxu0 %vm697_vm6, %v1360_v18 }
 0x3f9   :  { %1387 = vmatmul.msk.f32.gmra.mxu0 %vm697_vm6, %v1361_v19 }
 0x401   :  { %1388 = vmatmul.msk.f32.gmra.mxu0 %vm697_vm6, %v1362_v1 }
 0x44e   :  { %v1106_v28 = vpop.f32.mrf.mxu0 }
 0x44f   :  { %v1127_v30 = vadd.f32 %v1106_v28, %v1006_v27 }
 0x451   :  { %v1134_v32 = vmax.f32 %v1127_v30, 0.0 }
 0x453   :  { %1398 = vtanh.f32 %v1134_v32 }
 0x456   :  { %v1109_v36 = vpop.f32.mrf.mxu0 }
 0x457   :  { %v1128_v38 = vadd.f32 %v1109_v36, %v1007_v35 }
 0x459   :  { %v1399_v39 = vpop.eup %1398  ;;  %v1135_v40 = vmax.f32 %v1128_v38, 0.0 }
 0x45a   :  { %1148 = vst.msk [vmem:[%s2237_s9] sm:$0xff] %vm697_vm6, %v1399_v39 }
 0x45b   :  { %1400 = vtanh.f32 %v1135_v40 }
 0x45e   :  { %v1112_v45 = vpop.f32.mrf.mxu0 }
 0x45f   :  { %v1129_v47 = vadd.f32 %v1112_v45, %v1008_v44 }
 0x461   :  { %v1401_v48 = vpop.eup %1400  ;;  %v1136_v49 = vmax.f32 %v1129_v47, 0.0 }
 0x462   :  { %1149 = vst.msk [vmem:[%s2237_s9 + $0x8] sm:$0xff] %vm697_vm6, %v1401_v48 }
 0x463   :  { %1402 = vtanh.f32 %v1136_v49 }
 0x466   :  { %v1115_v54 = vpop.f32.mrf.mxu0 }
 0x467   :  { %v1130_v56 = vadd.f32 %v1115_v54, %v1009_v52 }
 0x469   :  { %v1403_v57 = vpop.eup %1402  ;;  %v1137_v58 = vmax.f32 %v1130_v56, 0.0 }
 0x46a   :  { %1150 = vst.msk [vmem:[%s2237_s9 + $0x10] sm:$0xff] %vm697_vm6, %v1403_v57 }
 0x46b   :  { %1404 = vtanh.f32 %v1137_v58 }
 0x46e   :  { %v1118_v2 = vpop.f32.mrf.mxu0 }
 0x46f   :  { %v1131_v4 = vadd.f32 %v1118_v2, %v1010_v61 }
 0x471   :  { %v1405_v5 = vpop.eup %1404  ;;  %v1138_v6 = vmax.f32 %v1131_v4, 0.0 }
 0x472   :  { %1151 = vst.msk [vmem:[%s2237_s9 + $0x18] sm:$0xff] %vm697_vm6, %v1405_v5 }
 0x473   :  { %1406 = vtanh.f32 %v1138_v6 }
 0x476   :  { %v1121_v9 = vpop.f32.mrf.mxu0 }
 0x477   :  { %v1132_v12 = vadd.f32 %v1121_v9, %v1011_v8 }
 0x479   :  { %v1407_v14 = vpop.eup %1406  ;;  %v1139_v15 = vmax.f32 %v1132_v12, 0.0 }
 0x47a   :  { %1152 = vst.msk [vmem:[%s2237_s9 + $0x20] sm:$0xff] %vm697_vm6, %v1407_v14 }
 0x47b   :  { %1408 = vtanh.f32 %v1139_v15 }
 0x47e   :  { %v1124_v17 = vpop.f32.mrf.mxu0 }
 0x47f   :  { %v1133_v18 = vadd.f32 %v1124_v17, %v1012_v0 }
 0x481   :  { %v1409_v19 = vpop.eup %1408  ;;  %v1140_v1 = vmax.f32 %v1133_v18, 0.0 }
 0x482   :  { %1153 = vst.msk [vmem:[%s2237_s9 + $0x28] sm:$0xff] %vm697_vm6, %v1409_v19 }
 0x483   :  { %1410 = vtanh.f32 %v1140_v1 }
 0x489   :  { %v1411_v10 = vpop.eup %1410 }
 0x48a   :  { %1154 = vst.msk [vmem:[%s2237_s9 + $0x30] sm:$0xff] %vm697_vm6, %v1411_v10 }

</bundles_post_ra>
